<compile_context>
chip_gen: v7x
topology: tpu7x:2x2x1
jax: 0.10.0
libtpu: 0.0.40
codegen_flags: <defaults>
</compile_context>

<pallas_src>
import functools

import jax
import jax.numpy as jnp
from jax.experimental import pallas as pl
from jax.experimental.pallas import tpu as pltpu


# ---------------------------------------------------------------------------
# Pallas kernel: one (TB, Din) batch tile per grid step, transposed compute.
#   h1^T = relu(W1 @ x^T + b1)                     (H, TB)  f32 acc
#   h2^T = relu(W2 @ bf16(h1^T) + b2)              (H, TB)  f32 acc
#   y    = sigmoid(sum_h(wo_h * h2^T) + bo)        (1, TB)  lane-dense out
# x, W1, W2 arrive as bf16 (MXU-native); biases / wo / elementwise are f32.
# bo lives in SMEM and is read as a scalar.
# ---------------------------------------------------------------------------
def mlp_kernel(x_ref, w1_ref, b1_ref, w2_ref, b2_ref, wo_ref, bo_ref, o_ref):
    x = x_ref[...]                                                # (TB, Din) bf16

    # Contract the last dim of both operands -> (H, TB): batch lands on the
    # lane axis, no relayout needed downstream.
    h = jax.lax.dot_general(
        w1_ref[...], x, (((1,), (1,)), ((), ())),
        preferred_element_type=jnp.float32)                       # (H, TB) f32
    h = jnp.maximum(h + b1_ref[...], 0.0)                         # f32 bias + ReLU

    h = jnp.dot(w2_ref[...], h.astype(jnp.bfloat16),
                preferred_element_type=jnp.float32)               # (H, TB) f32
    h = jnp.maximum(h + b2_ref[...], 0.0)

    # Output layer (outDim == 1): VPU multiply + sublane reduction instead of
    # an M=1 MXU matmul; result is already lane-dense.  bo is an SMEM scalar.
    y = jnp.sum(h * wo_ref[...], axis=0, keepdims=True) + bo_ref[0, 0]  # (1, TB)

    o_ref[...] = jax.nn.sigmoid(y)                                # sigmoid: outDim == 1


@functools.partial(jax.jit, static_argnames=("block_b",))
def mlp_forward(x, w1, b1, w2, b2, wo, bo, *, block_b=8192):
    """x: (batch, seqLen, vecLen) float32. Returns (batch, 1) float32."""
    batch = x.shape[0]
    in_dim = x.shape[1] * x.shape[2]
    hidden_dim = w1.shape[0]

    x2d = x.reshape(batch, in_dim)  # glue: torch .view(-1, vecLen*seqLen)

    # Batch tile: multiple of 512 (keeps all four 128x128 MXUs fed on v5e and
    # the output lane-dense), capped at block_b, and clamped so the grid keeps
    # >= ~4 steps when the batch is large enough -- lets the "parallel" axis
    # split across v7x's 2 TensorCores and still software-pipeline.
    tb = min(block_b, max(512, pl.cdiv(batch, 4 * 512) * 512))
    b_pad = pl.cdiv(batch, tb) * tb
    if b_pad != batch:
        x2d = jnp.pad(x2d, ((0, b_pad - batch), (0, 0)))

    # bf16 matmul operands: MXU-native on every generation (no fp32 emulation
    # passes) and halves x's HBM bytes.  Biases / wo / elementwise stay f32.
    x_bf = x2d.astype(jnp.bfloat16)
    w1_bf = w1.astype(jnp.bfloat16)
    w2_bf = w2.astype(jnp.bfloat16)

    resident = lambda i: (0, 0)  # weights/biases: same block every step -> VMEM-resident

    out = pl.pallas_call(
        mlp_kernel,
        out_shape=jax.ShapeDtypeStruct((1, b_pad), jnp.float32),
        grid=(b_pad // tb,),
        in_specs=[
            pl.BlockSpec((tb, in_dim), lambda i: (i, 0)),      # x: pipelined over batch
            pl.BlockSpec((hidden_dim, in_dim), resident),      # W1 (out, in)  bf16
            pl.BlockSpec((hidden_dim, 1), resident),           # b1 (H, 1)     f32
            pl.BlockSpec((hidden_dim, hidden_dim), resident),  # W2 (out, in)  bf16
            pl.BlockSpec((hidden_dim, 1), resident),           # b2 (H, 1)     f32
            pl.BlockSpec((hidden_dim, 1), resident),           # wo column     f32
            pl.BlockSpec(memory_space=pltpu.MemorySpace.SMEM), # bo scalar in SMEM
        ],
        out_specs=pl.BlockSpec((1, tb), lambda i: (0, i)),     # lane-dense output slab
        compiler_params=pltpu.CompilerParams(
            dimension_semantics=("parallel",),   # shard batch grid across v7x's 2 TCs
            vmem_limit_bytes=48 * 1024 * 1024,   # headroom for tb<=16384; < v7x 64 MiB
        ),
    )(x_bf, w1_bf, b1, w2_bf, b2, wo, bo)

    # (1, B_pad) -> (batch, outDim); metadata-only reshape/slice in the wrapper.
    return out[0, :batch].reshape(batch, 1)


# ---------------------------------------------------------------------------
# Deterministic parameter init (synthetic; not a checkpoint load).
# Weights kept in PyTorch (out, in) layout; biases as column vectors; the out
# layer weight is stored as a (H, 1) column for the in-kernel VPU reduction.
# ---------------------------------------------------------------------------
def init_params(key, in_dim, hidden_dim, out_dim):
    ks = jax.random.split(key, 6)

    def lin(kw, kb, fan_in, fan_out):
        bound = 1.0 / jnp.sqrt(fan_in)
        w = jax.random.uniform(kw, (fan_out, fan_in), jnp.float32, -bound, bound)
        b = jax.random.uniform(kb, (fan_out, 1), jnp.float32, -bound, bound)
        return w, b

    w1, b1 = lin(ks[0], ks[1], in_dim, hidden_dim)
    w2, b2 = lin(ks[2], ks[3], hidden_dim, hidden_dim)
    wo, bo = lin(ks[4], ks[5], hidden_dim, out_dim)
    wo = wo.T  # (out_dim, H) -> (H, out_dim) column for the reduction path
    return w1, b1, w2, b2, wo, bo


def reference_forward(x, w1, b1, w2, b2, wo, bo):
    """Plain-JAX f32 reference matching the PyTorch forward (eval mode)."""
    h = x.reshape(x.shape[0], -1)
    h = jnp.maximum(h @ w1.T + b1[:, 0], 0.0)
    h = jnp.maximum(h @ w2.T + b2[:, 0], 0.0)
    y = h @ wo + bo[:, 0]
    return jax.nn.sigmoid(y)


if __name__ == "__main__":
    # Config
    batch, seq_len, vec_len = 2, 8, 4
    hidden_dim, out_dim = 32, 1
    in_dim = seq_len * vec_len

    key = jax.random.PRNGKey(0)
    k_x, k_p = jax.random.split(key)

    x = jax.random.normal(k_x, (batch, seq_len, vec_len), jnp.float32)
    params = init_params(k_p, in_dim, hidden_dim, out_dim)

    out = jax.block_until_ready(mlp_forward(x, *params))
    ref = reference_forward(x, *params)

    assert out.shape == (batch, out_dim)
    # Tolerance relaxed vs f32 reference because matmul operands are bf16
    # (f32 accumulation); post-sigmoid error is ~1e-3.
    assert jnp.allclose(out, ref, atol=2e-2, rtol=2e-2), "mismatch vs reference"

    print("KERNEL_OK")
</pallas_src>

<mosaic_0001>
module attributes {stable_mosaic.version = 11 : i64} {
  func.func @mlp_kernel(%arg0: i32, %arg1: memref<512x32xbf16, #tpu.memory_space<vmem>>, %arg2: memref<32x32xbf16, #tpu.memory_space<vmem>>, %arg3: memref<32x1xf32, #tpu.memory_space<vmem>>, %arg4: memref<32x32xbf16, #tpu.memory_space<vmem>>, %arg5: memref<32x1xf32, #tpu.memory_space<vmem>>, %arg6: memref<32x1xf32, #tpu.memory_space<vmem>>, %arg7: memref<1x1xf32, #tpu.memory_space<smem>>, %arg8: memref<1x512xf32, #tpu.memory_space<vmem>>) attributes {dimension_semantics = [#tpu.dimension_semantics<parallel>], iteration_bounds = array<i64: 1>, scalar_prefetch = 0 : i64, scratch_operands = 0 : i64, tpu.core_type = #tpu.core_type<tc>, window_params = [{transform_indices = @transform_0, window_bounds = array<i64: 512, 32>}, {pipeline_mode = #tpu.pipeline_mode<synchronous>, transform_indices = @transform_1, window_bounds = array<i64: 32, 32>}, {pipeline_mode = #tpu.pipeline_mode<synchronous>, transform_indices = @transform_2, window_bounds = array<i64: 32, 1>}, {pipeline_mode = #tpu.pipeline_mode<synchronous>, transform_indices = @transform_3, window_bounds = array<i64: 32, 32>}, {pipeline_mode = #tpu.pipeline_mode<synchronous>, transform_indices = @transform_4, window_bounds = array<i64: 32, 1>}, {pipeline_mode = #tpu.pipeline_mode<synchronous>, transform_indices = @transform_5, window_bounds = array<i64: 32, 1>}, {transform_indices = @transform_6, window_bounds = array<i64: 1, 1>}, {transform_indices = @transform_7, window_bounds = array<i64: 1, 512>}]} {
    %c0 = arith.constant 0 : index
    %c0_0 = arith.constant 0 : index
    %0 = vector.load %arg1[%c0, %c0_0] : memref<512x32xbf16, #tpu.memory_space<vmem>>, vector<512x32xbf16>
    %c0_1 = arith.constant 0 : index
    %c0_2 = arith.constant 0 : index
    %1 = vector.load %arg2[%c0_1, %c0_2] : memref<32x32xbf16, #tpu.memory_space<vmem>>, vector<32x32xbf16>
    %cst = arith.constant dense<0.000000e+00> : vector<32x512xf32>
    %2 = tpu.matmul %1, %0, %cst {dimension_numbers = #tpu.dot_dimension_numbers<[1], [1], [0], [0], [0, 0, 1, 0], [], []>} : vector<32x32xbf16>, vector<512x32xbf16>, vector<32x512xf32> -> vector<32x512xf32>
    %c0_3 = arith.constant 0 : index
    %c0_4 = arith.constant 0 : index
    %3 = vector.load %arg3[%c0_3, %c0_4] : memref<32x1xf32, #tpu.memory_space<vmem>>, vector<32x1xf32>
    %4 = vector.broadcast %3 : vector<32x1xf32> to vector<32x512xf32>
    %5 = arith.addf %2, %4 : vector<32x512xf32>
    %cst_5 = arith.constant 0.000000e+00 : f32
    %6 = vector.broadcast %cst_5 : f32 to vector<32x512xf32>
    %7 = arith.maximumf %5, %6 : vector<32x512xf32>
    %c0_6 = arith.constant 0 : index
    %c0_7 = arith.constant 0 : index
    %8 = vector.load %arg4[%c0_6, %c0_7] : memref<32x32xbf16, #tpu.memory_space<vmem>>, vector<32x32xbf16>
    %9 = arith.truncf %7 : vector<32x512xf32> to vector<32x512xbf16>
    %cst_8 = arith.constant dense<0.000000e+00> : vector<32x512xf32>
    %10 = tpu.matmul %8, %9, %cst_8 {dimension_numbers = #tpu.dot_dimension_numbers<[1], [0], [0], [1], [0, 0, 1, 1], [], []>} : vector<32x32xbf16>, vector<32x512xbf16>, vector<32x512xf32> -> vector<32x512xf32>
    %c0_9 = arith.constant 0 : index
    %c0_10 = arith.constant 0 : index
    %11 = vector.load %arg5[%c0_9, %c0_10] : memref<32x1xf32, #tpu.memory_space<vmem>>, vector<32x1xf32>
    %12 = vector.broadcast %11 : vector<32x1xf32> to vector<32x512xf32>
    %13 = arith.addf %10, %12 : vector<32x512xf32>
    %cst_11 = arith.constant 0.000000e+00 : f32
    %14 = vector.broadcast %cst_11 : f32 to vector<32x512xf32>
    %15 = arith.maximumf %13, %14 : vector<32x512xf32>
    %c0_12 = arith.constant 0 : index
    %c0_13 = arith.constant 0 : index
    %16 = vector.load %arg6[%c0_12, %c0_13] : memref<32x1xf32, #tpu.memory_space<vmem>>, vector<32x1xf32>
    %17 = vector.broadcast %16 : vector<32x1xf32> to vector<32x512xf32>
    %18 = arith.mulf %15, %17 : vector<32x512xf32>
    %cst_14 = arith.constant dense<0.000000e+00> : vector<512xf32>
    %19 = vector.multi_reduction <add>, %18, %cst_14 [0] : vector<32x512xf32> to vector<512xf32>
    %20 = vector.shape_cast %19 : vector<512xf32> to vector<1x512xf32>
    %c0_15 = arith.constant 0 : index
    %c0_16 = arith.constant 0 : index
    %21 = memref.load %arg7[%c0_15, %c0_16] : memref<1x1xf32, #tpu.memory_space<smem>>
    %22 = vector.broadcast %21 : f32 to vector<1x512xf32>
    %23 = arith.addf %20, %22 : vector<1x512xf32>
    %24 = arith.negf %23 : vector<1x512xf32>
    %25 = math.exp %24 : vector<1x512xf32>
    %cst_17 = arith.constant 1.000000e+00 : f32
    %26 = vector.broadcast %cst_17 : f32 to vector<1x512xf32>
    %27 = arith.addf %26, %25 : vector<1x512xf32>
    %28 = arith.divf %26, %27 : vector<1x512xf32>
    %c0_18 = arith.constant 0 : index
    %c0_19 = arith.constant 0 : index
    %29 = vector.load %arg8[%c0_18, %c0_19] : memref<1x512xf32, #tpu.memory_space<vmem>>, vector<1x512xf32>
    tpu.vector_store %arg8[%c0_18, %c0_19], %28 {strides = array<i32>} : memref<1x512xf32, #tpu.memory_space<vmem>>, vector<1x512xf32>,
    return
  }
  func.func @transform_0(%arg0: i32) -> (i32, i32) {
    %c0_i32 = arith.constant 0 : i32
    %c0_i32_0 = arith.constant 0 : i32
    return %arg0, %c0_i32 : i32, i32
  }
  func.func @transform_1(%arg0: i32) -> (i32, i32) {
    %c0_i32 = arith.constant 0 : i32
    %c0_i32_0 = arith.constant 0 : i32
    %c0_i32_1 = arith.constant 0 : i32
    return %c0_i32, %c0_i32_0 : i32, i32
  }
  func.func @transform_2(%arg0: i32) -> (i32, i32) {
    %c0_i32 = arith.constant 0 : i32
    %c0_i32_0 = arith.constant 0 : i32
    %c0_i32_1 = arith.constant 0 : i32
    return %c0_i32, %c0_i32_0 : i32, i32
  }
  func.func @transform_3(%arg0: i32) -> (i32, i32) {
    %c0_i32 = arith.constant 0 : i32
    %c0_i32_0 = arith.constant 0 : i32
    %c0_i32_1 = arith.constant 0 : i32
    return %c0_i32, %c0_i32_0 : i32, i32
  }
  func.func @transform_4(%arg0: i32) -> (i32, i32) {
    %c0_i32 = arith.constant 0 : i32
    %c0_i32_0 = arith.constant 0 : i32
    %c0_i32_1 = arith.constant 0 : i32
    return %c0_i32, %c0_i32_0 : i32, i32
  }
  func.func @transform_5(%arg0: i32) -> (i32, i32) {
    %c0_i32 = arith.constant 0 : i32
    %c0_i32_0 = arith.constant 0 : i32
    %c0_i32_1 = arith.constant 0 : i32
    return %c0_i32, %c0_i32_0 : i32, i32
  }
  func.func @transform_6(%arg0: i32) -> (i32, i32) {
    %c0_i32 = arith.constant 0 : i32
    %c0_i32_0 = arith.constant 0 : i32
    %c0_i32_1 = arith.constant 0 : i32
    return %c0_i32, %c0_i32_0 : i32, i32
  }
  func.func @transform_7(%arg0: i32) -> (i32, i32) {
    %c0_i32 = arith.constant 0 : i32
    %c0_i32_0 = arith.constant 0 : i32
    return %c0_i32, %arg0 : i32, i32
  }
}

</mosaic_0001>

<bundles_post_ra>
// kernel: mlp_forward.1
= control target key start
LH: loop header
LB: loop body
LE: loop exit
PB: predicated region body
PF: predicated region fallthrough
CT: control target
= control target key end

     0   :  { %vm290_vm0 = vcmask 261120   ;;  %v993_v1 = vmov 0   ;;  %s1241_s0 = inlined_call_operand.vmem [shape: bf16[512,32], index: 0, kind: input, shape index: {}]   ;;  %s1242_s1 = inlined_call_operand.vmem [shape: bf16[32,32], index: 1, kind: input, shape index: {}]   ;;  %s1243_s2 = inlined_call_operand.vmem [shape: f32[32,1], index: 2, kind: input, shape index: {}]   ;;  %s1244_s4 = inlined_call_operand.vmem [shape: f32[32,1], index: 4, kind: input, shape index: {}]   ;;  %s1245_s5 = inlined_call_operand.vmem [shape: f32[32,1], index: 5, kind: input, shape index: {}]   ;;  %s1246_s3 = inlined_call_operand.vmem [shape: bf16[32,32], index: 3, kind: input, shape index: {}]   ;;  %s1247_s6 = inlined_call_operand.<no memory space> [shape: f32[1,1], index: 6, kind: input, shape index: {}]   ;;  %s1248_s7 = inlined_call_operand.vmem [shape: f32[1,512], index: 7, kind: output, shape index: {}]  }
   0x1   :  { %v941_v0 = vld [vmem:[%s1241_s0 + $0x40] sm:$0xff]   ;;  %939 = vset.pattern.permute.xlu0 %v993_v1  ;;  %940 = vset.pattern.permute.xlu1 %v993_v1  ;;  %v945_v6 = vld [vmem:[%s1241_s0 + $0x48] sm:$0xff]   ;;  %v949_v12 = vld [vmem:[%s1241_s0 + $0x50] sm:$0xff]  }
   0x2   :  { %v942_v2 = vld [vmem:[%s1241_s0 + $0xc0] sm:$0xff]   ;;  %921 = vmatprep.subr.msk.bf16.mxu0 %vm290_vm0, %v941_v0  ;;  %v946_v8 = vld [vmem:[%s1241_s0 + $0xc8] sm:$0xff]   ;;  %v950_v14 = vld [vmem:[%s1241_s0 + $0xd0] sm:$0xff]  }
   0x3   :  { %v943_v3 = vld [vmem:[%s1241_s0] sm:$0xff]   ;;  %929 = vmatprep.subr.msk.bf16.mxu1 %vm290_vm0, %v942_v2  ;;  %v947_v9 = vld [vmem:[%s1241_s0 + $0x8] sm:$0xff]   ;;  %v951_v15 = vld [vmem:[%s1241_s0 + $0x10] sm:$0xff]  }
   0x4   :  { %v944_v4 = vld [vmem:[%s1241_s0 + $0x80] sm:$0xff]   ;;  %v298_v5 = vsel %vm290_vm0, %v943_v3, 0  ;;  %v948_v10 = vld [vmem:[%s1241_s0 + $0x88] sm:$0xff]   ;;  %v301_v11 = vsel %vm290_vm0, %v947_v9, 0  ;;  %v952_v16 = vld [vmem:[%s1241_s0 + $0x90] sm:$0xff]   ;;  %v304_v17 = vsel %vm290_vm0, %v951_v15, 0 }
   0x5   :  { %882 = vmatpush3.bf16.xpose.msra.mxu0 %v298_v5  ;;  %v346_v7 = vsel %vm290_vm0, %v944_v4, 0  ;;  %v349_v13 = vsel %vm290_vm0, %v948_v10, 0  ;;  %v953_v18 = vld [vmem:[%s1241_s0 + $0x58] sm:$0xff]   ;;  %v352_v19 = vsel %vm290_vm0, %v952_v16, 0  ;;  %v957_v24 = vld [vmem:[%s1241_s0 + $0x60] sm:$0xff]   ;;  %v961_v31 = vld [vmem:[%s1241_s0 + $0x68] sm:$0xff]  }
   0x6   :  { %902 = vmatpush3.bf16.xpose.msra.mxu1 %v346_v7  ;;  %922 = vmatprep.subr.msk.bf16.mxu0 %vm290_vm0, %v945_v6  ;;  %v954_v20 = vld [vmem:[%s1241_s0 + $0xd8] sm:$0xff]   ;;  %v958_v26 = vld [vmem:[%s1241_s0 + $0xe0] sm:$0xff]   ;;  %v98_v33 = vld [vmem:[%s1243_s2 + $0x10] sm:$0xff] }
   0x7   :  { %930 = vmatprep.subr.msk.bf16.mxu1 %vm290_vm0, %v946_v8  ;;  %v955_v21 = vld [vmem:[%s1241_s0 + $0x18] sm:$0xff]   ;;  %v959_v27 = vld [vmem:[%s1241_s0 + $0x20] sm:$0xff]   ;;  %v962_v35 = vld [vmem:[%s1241_s0 + $0xe8] sm:$0xff]   ;;  %112 = vperm.xlu1 %940, %v98_v33  }
   0x8   :  { %v956_v22 = vld [vmem:[%s1241_s0 + $0x98] sm:$0xff]   ;;  %v307_v23 = vsel %vm290_vm0, %v955_v21, 0  ;;  %v960_v28 = vld [vmem:[%s1241_s0 + $0xa0] sm:$0xff]   ;;  %v310_v30 = vsel %vm290_vm0, %v959_v27, 0  ;;  %v97_v36 = vld [vmem:[%s1243_s2 + $0x8] sm:$0xff] }
   0x9   :  { %v355_v25 = vsel %vm290_vm0, %v956_v22, 0  ;;  %v1118_v29 = vld [vmem:[%s1242_s1] sm:$0xff]   ;;  %v358_v34 = vsel %vm290_vm0, %v960_v28, 0  ;;  %v99_v37 = vld [vmem:[%s1243_s2 + $0x18] sm:$0xff]  ;;  %v963_v38 = vld [vmem:[%s1241_s0 + $0x28] sm:$0xff]  }
   0xa   :  { %897 = vmatprep.mubr.msk.bf16.mxu0 %vm290_vm0, %v1118_v29  ;;  %917 = vmatprep.mubr.msk.bf16.mxu1 %vm290_vm0, %v1118_v29  ;;  %v96_v32 = vld [vmem:[%s1243_s2] sm:$0xff]  ;;  %v964_v39 = vld [vmem:[%s1241_s0 + $0xa8] sm:$0xff]   ;;  %v313_v42 = vsel %vm290_vm0, %v963_v38, 0  ;;  %v965_v43 = vld [vmem:[%s1241_s0 + $0x70] sm:$0xff]  }
   0xb   :  { %102 = vperm.xlu0 %939, %v96_v32   ;;  %v527_v40 = vld [vmem:[%s1244_s4] sm:$0xff]  ;;  %117 = vperm.xlu1 %940, %v99_v37   ;;  %v528_v41 = vld [vmem:[%s1244_s4 + $0x8] sm:$0xff]  ;;  %v361_v44 = vsel %vm290_vm0, %v964_v39, 0  ;;  %v966_v45 = vld [vmem:[%s1241_s0 + $0xf0] sm:$0xff]  }
   0xc   :  { %v529_v46 = vld [vmem:[%s1244_s4 + $0x10] sm:$0xff]  ;;  %v530_v47 = vld [vmem:[%s1244_s4 + $0x18] sm:$0xff]  ;;  %v689_v50 = vld [vmem:[%s1245_s5] sm:$0xff] }
   0xd   :  { %884 = vmatpush3.bf16.xpose.msra.mxu0 %v301_v11  ;;  %v967_v48 = vld [vmem:[%s1241_s0 + $0x30] sm:$0xff]   ;;  %v690_v51 = vld [vmem:[%s1245_s5 + $0x8] sm:$0xff]  ;;  %v969_v53 = vld [vmem:[%s1241_s0 + $0x78] sm:$0xff]  }
   0xe   :  { %904 = vmatpush3.bf16.xpose.msra.mxu1 %v349_v13  ;;  %923 = vmatprep.subr.msk.bf16.mxu0 %vm290_vm0, %v949_v12  ;;  %v968_v49 = vld [vmem:[%s1241_s0 + $0xb0] sm:$0xff]   ;;  %v316_v52 = vsel %vm290_vm0, %v967_v48, 0  ;;  %v970_v55 = vld [vmem:[%s1241_s0 + $0xf8] sm:$0xff]   ;;  %v974_v62 = vld [vmem:[%s1242_s1 + $0x8] sm:$0xff]  }
   0xf   :  { %931 = vmatprep.subr.msk.bf16.mxu1 %vm290_vm0, %v950_v14  ;;  %107 = vperm.xlu0 %939, %v97_v36   ;;  %v364_v54 = vsel %vm290_vm0, %v968_v49, 0  ;;  %v691_v56 = vld [vmem:[%s1245_s5 + $0x10] sm:$0xff]  ;;  %v692_v57 = vld [vmem:[%s1245_s5 + $0x18] sm:$0xff] }
  0x10   :  { %538 = vperm.xlu1 %940, %v528_v41   ;;  %v971_v58 = vld [vmem:[%s1241_s0 + $0x38] sm:$0xff]  }
  0x11   :  { %v972_v59 = vld [vmem:[%s1241_s0 + $0xb8] sm:$0xff]   ;;  %v319_v60 = vsel %vm290_vm0, %v971_v58, 0 }
  0x12   :  { %v367_v61 = vsel %vm290_vm0, %v972_v59, 0 }
  0x13   :  { %533 = vperm.xlu0 %939, %v527_v40  }
  0x14   :  { %548 = vperm.xlu1 %940, %v530_v47  }
  0x15   :  { %886 = vmatpush3.bf16.xpose.msra.mxu0 %v304_v17 }
  0x16   :  { %906 = vmatpush3.bf16.xpose.msra.mxu1 %v352_v19  ;;  %924 = vmatprep.subr.msk.bf16.mxu0 %vm290_vm0, %v953_v18 }
  0x17   :  { %932 = vmatprep.subr.msk.bf16.mxu1 %vm290_vm0, %v954_v20  ;;  %543 = vperm.xlu0 %939, %v529_v46  }
  0x18   :  { %700 = vperm.xlu1 %940, %v690_v51  }
  0x1b   :  { %695 = vperm.xlu0 %939, %v689_v50  }
  0x1c   :  { %710 = vperm.xlu1 %940, %v692_v57  }
  0x1d   :  { %888 = vmatpush3.bf16.xpose.msra.mxu0 %v307_v23 }
  0x1e   :  { %908 = vmatpush3.bf16.xpose.msra.mxu1 %v355_v25  ;;  %925 = vmatprep.subr.msk.bf16.mxu0 %vm290_vm0, %v957_v24 }
  0x1f   :  { %933 = vmatprep.subr.msk.bf16.mxu1 %vm290_vm0, %v958_v26  ;;  %705 = vperm.xlu0 %939, %v691_v56  }
  0x25   :  { %890 = vmatpush3.bf16.xpose.msra.mxu0 %v310_v30 }
  0x26   :  { %910 = vmatpush3.bf16.xpose.msra.mxu1 %v358_v34  ;;  %926 = vmatprep.subr.msk.bf16.mxu0 %vm290_vm0, %v961_v31 }
  0x27   :  { %934 = vmatprep.subr.msk.bf16.mxu1 %vm290_vm0, %v962_v35 }
  0x2d   :  { %892 = vmatpush3.bf16.xpose.msra.mxu0 %v313_v42 }
  0x2e   :  { %912 = vmatpush3.bf16.xpose.msra.mxu1 %v361_v44  ;;  %927 = vmatprep.subr.msk.bf16.mxu0 %vm290_vm0, %v965_v43 }
  0x2f   :  { %935 = vmatprep.subr.msk.bf16.mxu1 %vm290_vm0, %v966_v45 }
  0x35   :  { %894 = vmatpush3.bf16.xpose.msra.mxu0 %v316_v52 }
  0x36   :  { %914 = vmatpush3.bf16.xpose.msra.mxu1 %v364_v54  ;;  %928 = vmatprep.subr.msk.bf16.mxu0 %vm290_vm0, %v969_v53 }
  0x37   :  { %936 = vmatprep.subr.msk.bf16.mxu1 %vm290_vm0, %v970_v55 }
  0x3d   :  { %896 = vmatpush3.bf16.xpose.msra.mxu0 %v319_v60  ;;  %v975_v60 = vld [vmem:[%s1246_s3] sm:$0xff]  }
  0x3e   :  { %916 = vmatpush3.bf16.xpose.msra.mxu1 %v367_v61  ;;  %v976_v61 = vld [vmem:[%s1246_s3 + $0x8] sm:$0xff]  }
  0x44   :  { %898 = vmatmul.mubr.msk.bf16.vlgmr.msra.gmra.mrb[0].mxu0 %vm290_vm0, %v1118_v29 }
  0x45   :  { %918 = vmatmul.mubr.msk.bf16.vlgmr.msra.gmra.mrb[0].mxu1 %vm290_vm0, %v1118_v29  ;;  %899 = vmatprep.mubr.msk.bf16.mxu0 %vm290_vm0, %v974_v62 }
  0x46   :  { %919 = vmatprep.mubr.msk.bf16.mxu1 %vm290_vm0, %v974_v62 }
  0x4c   :  { %900 = vmatmul.mubr.msk.bf16.gmra.mrb[4].mxu0 %vm290_vm0, %v974_v62 }
  0x4d   :  { %920 = vmatmul.mubr.msk.bf16.gmra.mrb[4].mxu1 %vm290_vm0, %v974_v62  ;;  %599 = vmatprep.mubr.bf16.mxu0 %v993_v1 }
  0x4e   :  { %652 = vmatprep.mubr.bf16.mxu1 %v993_v1 }
  0x86   :  { %v113_v0 = vpop.permute.xlu1 %112 }
  0x8a   :  { %v103_v63 = vpop.permute.xlu0 %102  ;;  %v118_v28 = vpop.permute.xlu1 %117 }
  0x8e   :  { %v108_v2 = vpop.permute.xlu0 %107 }
  0x92   :  { %v534_v62 = vpop.permute.xlu0 %533 }
 0x117   :  { %v427_v3 = vpop.f32.mrb[0].mxu0 }
 0x118   :  { %v428_v4 = vadd.f32 %v427_v3, %v103_v63  ;;  %v480_v5 = vpop.f32.mrb[0].mxu1  ;;  %v429_v6 = vpop.f32.mrb[1].mxu0 }
 0x119   :  { %v481_v7 = vadd.f32 %v480_v5, %v103_v63  ;;  %v430_v8 = vadd.f32 %v429_v6, %v103_v63  ;;  %v482_v9 = vpop.f32.mrb[1].mxu1  ;;  %v431_v10 = vpop.f32.mrb[2].mxu0 }
 0x11a   :  { %v483_v11 = vadd.f32 %v482_v9, %v103_v63  ;;  %v432_v12 = vadd.f32 %v431_v10, %v108_v2  ;;  %v484_v13 = vpop.f32.mrb[2].mxu1  ;;  %v433_v14 = vpop.f32.mrb[3].mxu0  ;;  %v499_v18 = vmax.f32 %v428_v4, 0.0 }
 0x11b   :  { %v485_v15 = vadd.f32 %v484_v13, %v108_v2  ;;  %v434_v16 = vadd.f32 %v433_v14, %v108_v2  ;;  %v486_v17 = vpop.f32.mrb[3].mxu1  ;;  %v501_v21 = vmax.f32 %v481_v7, 0.0  ;;  %v500_v22 = vmax.f32 %v430_v8, 0.0  ;;  %v539_v63 = vpop.permute.xlu1 %538 }
 0x11c   :  { %v503_v19 = vmax.f32 %v432_v12, 0.0  ;;  %v487_v20 = vadd.f32 %v486_v17, %v108_v2  ;;  %v502_v25 = vmax.f32 %v483_v11, 0.0 }
 0x11d   :  { %v505_v23 = vmax.f32 %v485_v15, 0.0  ;;  %v504_v24 = vmax.f32 %v434_v16, 0.0 }
 0x11e   :  { %v519_v26 = vpack.c.bf16 %v503_v19, %v499_v18  ;;  %v506_v27 = vmax.f32 %v487_v20, 0.0 }
 0x11f   :  { %v521_v29 = vpack.c.bf16 %v505_v23, %v501_v21  ;;  %v520_v30 = vpack.c.bf16 %v504_v24, %v500_v22  ;;  %v437_v31 = vpop.f32.mrb[4].mxu0  ;;  %v549_v2 = vpop.permute.xlu1 %548 }
 0x120   :  { %v522_v32 = vpack.c.bf16 %v506_v27, %v502_v25  ;;  %v438_v33 = vadd.f32 %v437_v31, %v113_v0  ;;  %v490_v34 = vpop.f32.mrb[4].mxu1  ;;  %v439_v35 = vpop.f32.mrb[5].mxu0 }
 0x121   :  { %v491_v36 = vadd.f32 %v490_v34, %v113_v0  ;;  %v440_v37 = vadd.f32 %v439_v35, %v113_v0  ;;  %v492_v38 = vpop.f32.mrb[5].mxu1  ;;  %v441_v39 = vpop.f32.mrb[6].mxu0  ;;  %567 = vmatprep.subr.bf16.mxu0 %v520_v30 }
 0x122   :  { %v493_v40 = vadd.f32 %v492_v38, %v113_v0  ;;  %v442_v41 = vadd.f32 %v441_v39, %v118_v28  ;;  %v494_v42 = vpop.f32.mrb[6].mxu1  ;;  %620 = vmatprep.subr.bf16.mxu1 %v522_v32  ;;  %v443_v43 = vpop.f32.mrb[7].mxu0  ;;  %568 = vmatpush1.bf16.msra.mxu0 %v519_v26  ;;  %v507_v47 = vmax.f32 %v438_v33, 0.0 }
 0x123   :  { %v495_v44 = vadd.f32 %v494_v42, %v118_v28  ;;  %v444_v45 = vadd.f32 %v443_v43, %v118_v28  ;;  %v496_v46 = vpop.f32.mrb[7].mxu1  ;;  %621 = vmatpush1.bf16.msra.mxu1 %v521_v29  ;;  %v509_v50 = vmax.f32 %v491_v36, 0.0  ;;  %v508_v51 = vmax.f32 %v440_v37, 0.0  ;;  %v544_v0 = vpop.permute.xlu0 %543 }
 0x124   :  { %v511_v48 = vmax.f32 %v442_v41, 0.0  ;;  %v497_v49 = vadd.f32 %v496_v46, %v118_v28  ;;  %v510_v54 = vmax.f32 %v493_v40, 0.0  ;;  %v701_v24 = vpop.permute.xlu1 %700 }
 0x125   :  { %v513_v52 = vmax.f32 %v495_v44, 0.0  ;;  %v512_v53 = vmax.f32 %v444_v45, 0.0 }
 0x126   :  { %v523_v55 = vpack.c.bf16 %v511_v48, %v507_v47  ;;  %v514_v56 = vmax.f32 %v497_v49, 0.0 }
 0x127   :  { %v525_v57 = vpack.c.bf16 %v513_v52, %v509_v50  ;;  %v524_v58 = vpack.c.bf16 %v512_v53, %v508_v51  ;;  %v696_v23 = vpop.permute.xlu0 %695 }
 0x128   :  { %v526_v59 = vpack.c.bf16 %v514_v56, %v510_v54 }
 0x129   :  { %569 = vmatprep.subr.bf16.mxu0 %v524_v58 }
 0x12a   :  { %622 = vmatprep.subr.bf16.mxu1 %v526_v59  ;;  %570 = vmatpush1.bf16.msra.mxu0 %v523_v55 }
 0x12b   :  { %623 = vmatpush1.bf16.msra.mxu1 %v525_v57  ;;  %v706_v53 = vpop.permute.xlu0 %705 }
 0x12d   :  { %873 = vmatmul.mubr.msk.bf16.vlgmr.msra.gmra.mrb[8].mxu0 %vm290_vm0, %v975_v60 }
 0x12e   :  { %875 = vmatmul.mubr.msk.bf16.vlgmr.msra.gmra.mrb[8].mxu1 %vm290_vm0, %v975_v60  ;;  %609 = vmatprep.mubr.bf16.mxu0 %v993_v1 }
 0x12f   :  { %662 = vmatprep.mubr.bf16.mxu1 %v993_v1 }
 0x135   :  { %874 = vmatmul.mubr.msk.bf16.gmra.mrb[12].mxu0 %vm290_vm0, %v976_v61 }
 0x136   :  { %876 = vmatmul.mubr.msk.bf16.gmra.mrb[12].mxu1 %vm290_vm0, %v976_v61 }
 0x200   :  { %v601_v3 = vpop.f32.mrb[8].mxu0 }
 0x201   :  { %v602_v4 = vadd.f32 %v601_v3, %v534_v62  ;;  %v654_v5 = vpop.f32.mrb[8].mxu1  ;;  %v603_v6 = vpop.f32.mrb[9].mxu0 }
 0x202   :  { %v655_v7 = vadd.f32 %v654_v5, %v534_v62  ;;  %v604_v8 = vadd.f32 %v603_v6, %v534_v62  ;;  %v656_v9 = vpop.f32.mrb[9].mxu1  ;;  %v605_v1 = vpop.f32.mrb[10].mxu0 }
 0x203   :  { %v673_v10 = vmax.f32 %v602_v4, 0.0  ;;  %v657_v11 = vadd.f32 %v656_v9, %v534_v62  ;;  %v606_v12 = vadd.f32 %v605_v1, %v539_v63  ;;  %v658_v13 = vpop.f32.mrb[10].mxu1  ;;  %v607_v14 = vpop.f32.mrb[11].mxu0 }
 0x204   :  { %v675_v15 = vmax.f32 %v655_v7, 0.0  ;;  %v674_v16 = vmax.f32 %v604_v8, 0.0  ;;  %v659_v17 = vadd.f32 %v658_v13, %v539_v63  ;;  %v608_v18 = vadd.f32 %v607_v14, %v539_v63  ;;  %v660_v19 = vpop.f32.mrb[11].mxu1 }
 0x205   :  { %v676_v20 = vmax.f32 %v657_v11, 0.0  ;;  %v677_v21 = vmax.f32 %v606_v12, 0.0  ;;  %v661_v22 = vadd.f32 %v660_v19, %v539_v63  ;;  %v713_v27 = vmul.f32 %v696_v23, %v673_v10  ;;  %v711_v63 = vpop.permute.xlu1 %710 }
 0x206   :  { %v679_v25 = vmax.f32 %v659_v17, 0.0  ;;  %v678_v26 = vmax.f32 %v608_v18, 0.0  ;;  %v715_v30 = vmul.f32 %v696_v23, %v675_v15  ;;  %v714_v31 = vmul.f32 %v696_v23, %v674_v16 }
 0x207   :  { %v717_v28 = vmul.f32 %v701_v24, %v677_v21  ;;  %v680_v29 = vmax.f32 %v661_v22, 0.0  ;;  %v716_v35 = vmul.f32 %v696_v23, %v676_v20 }
 0x208   :  { %v719_v32 = vmul.f32 %v701_v24, %v679_v25  ;;  %v718_v33 = vmul.f32 %v701_v24, %v678_v26  ;;  %v611_v34 = vpop.f32.mrb[12].mxu0 }
 0x209   :  { %v729_v36 = vadd.f32 %v717_v28, %v713_v27  ;;  %v720_v37 = vmul.f32 %v701_v24, %v680_v29  ;;  %v612_v38 = vadd.f32 %v611_v34, %v544_v0  ;;  %v664_v39 = vpop.f32.mrb[12].mxu1  ;;  %v613_v40 = vpop.f32.mrb[13].mxu0 }
 0x20a   :  { %v747_v41 = vadd.f32 %v719_v32, %v715_v30  ;;  %v738_v42 = vadd.f32 %v718_v33, %v714_v31  ;;  %v665_v43 = vadd.f32 %v664_v39, %v544_v0  ;;  %v614_v44 = vadd.f32 %v613_v40, %v544_v0  ;;  %v666_v45 = vpop.f32.mrb[13].mxu1  ;;  %v615_v46 = vpop.f32.mrb[14].mxu0 }
 0x20b   :  { %v756_v47 = vadd.f32 %v720_v37, %v716_v35  ;;  %v681_v48 = vmax.f32 %v612_v38, 0.0  ;;  %v667_v49 = vadd.f32 %v666_v45, %v544_v0  ;;  %v616_v50 = vadd.f32 %v615_v46, %v549_v2  ;;  %v668_v51 = vpop.f32.mrb[14].mxu1  ;;  %v617_v52 = vpop.f32.mrb[15].mxu0 }
 0x20c   :  { %v683_v54 = vmax.f32 %v665_v43, 0.0  ;;  %v682_v55 = vmax.f32 %v614_v44, 0.0  ;;  %v669_v56 = vadd.f32 %v668_v51, %v549_v2  ;;  %v618_v57 = vadd.f32 %v617_v52, %v549_v2  ;;  %v670_v58 = vpop.f32.mrb[15].mxu1 }
 0x20d   :  { %v721_v59 = vmul.f32 %v706_v53, %v681_v48  ;;  %v684_v60 = vmax.f32 %v667_v49, 0.0  ;;  %v685_v61 = vmax.f32 %v616_v50, 0.0  ;;  %v671_v62 = vadd.f32 %v670_v58, %v549_v2 }
 0x20e   :  { %v723_v3 = vmul.f32 %v706_v53, %v683_v54  ;;  %v722_v4 = vmul.f32 %v706_v53, %v682_v55  ;;  %v687_v5 = vmax.f32 %v669_v56, 0.0  ;;  %v686_v6 = vmax.f32 %v618_v57, 0.0 }
 0x20f   :  { %v730_v7 = vadd.f32 %v729_v36, %v721_v59  ;;  %v724_v0 = vmul.f32 %v706_v53, %v684_v60  ;;  %v725_v8 = vmul.f32 %v711_v63, %v685_v61  ;;  %v688_v9 = vmax.f32 %v671_v62, 0.0 }
 0x210   :  { %v748_v1 = vadd.f32 %v747_v41, %v723_v3  ;;  %v739_v10 = vadd.f32 %v738_v42, %v722_v4  ;;  %v727_v11 = vmul.f32 %v711_v63, %v687_v5  ;;  %v726_v12 = vmul.f32 %v711_v63, %v686_v6 }
 0x211   :  { %v757_v13 = vadd.f32 %v756_v47, %v724_v0  ;;  %v731_v14 = vadd.f32 %v730_v7, %v725_v8  ;;  %v728_v15 = vmul.f32 %v711_v63, %v688_v9  ;;  %v766_v35 = vstv %s1247_s6 }
 0x212   :  { %v749_v16 = vadd.f32 %v748_v1, %v727_v11  ;;  %v740_v17 = vadd.f32 %v739_v10, %v726_v12  ;;  %v994_v59 = vmov 1966171168   ;;  %v804_v61 = vlaneseq }
 0x213   :  { %v732_v18 = vrot.slane %v731_v14, 4  ;;  %v758_v2 = vadd.f32 %v757_v13, %v728_v15  ;;  %v802_v60 = vunpack.c.l.s4 %v994_v59 }
 0x214   :  { %v750_v19 = vrot.slane %v749_v16, 4  ;;  %v741_v20 = vrot.slane %v740_v17, 4  ;;  %v805_v63 = vshrl.u32 %v804_v61, 7  ;;  %vm826_vm1 = vcmp.lt.s32.totalorder %v804_v61, 512 }
 0x215   :  { %v733_v21 = vadd.f32 %v732_v18, %v731_v14  ;;  %v759_v22 = vrot.slane %v758_v2, 4  ;;  %v803_v62 = vunpack.c.0.s8 %v802_v60 }
 0x216   :  { %v751_v23 = vadd.f32 %v750_v19, %v749_v16  ;;  %v742_v24 = vadd.f32 %v741_v20, %v740_v17 }
 0x217   :  { %v734_v25 = vrot.slane %v733_v21, 2  ;;  %v760_v26 = vadd.f32 %v759_v22, %v758_v2  ;;  %v806_v5 = vsub.s32 %v803_v62, %v805_v63 }
 0x218   :  { %v752_v27 = vrot.slane %v751_v23, 2  ;;  %v743_v28 = vrot.slane %v742_v24, 2 }
 0x219   :  { %v735_v29 = vadd.f32 %v734_v25, %v733_v21  ;;  %v761_v30 = vrot.slane %v760_v26, 2 }
 0x21a   :  { %v753_v31 = vadd.f32 %v752_v27, %v751_v23  ;;  %v744_v32 = vadd.f32 %v743_v28, %v742_v24 }
 0x21b   :  { %v736_v33 = vrot.slane %v735_v29, 1  ;;  %v762_v34 = vadd.f32 %v761_v30, %v760_v26 }
 0x21c   :  { %v754_v36 = vrot.slane %v753_v31, 1  ;;  %v745_v37 = vrot.slane %v744_v32, 1 }
 0x21d   :  { %v737_v38 = vadd.f32 %v736_v33, %v735_v29  ;;  %v763_v39 = vrot.slane %v762_v34, 1 }
 0x21e   :  { %v755_v40 = vadd.f32 %v754_v36, %v753_v31  ;;  %v746_v41 = vadd.f32 %v745_v37, %v744_v32 }
 0x21f   :  { %v767_v42 = vadd.f32 %v766_v35, %v737_v38  ;;  %v764_v43 = vadd.f32 %v763_v39, %v762_v34 }
 0x220   :  { %v769_v44 = vadd.f32 %v766_v35, %v755_v40  ;;  %v768_v45 = vadd.f32 %v766_v35, %v746_v41 }
 0x221   :  { %v877_v46 = vmul.f32 -1.442695, %v767_v42  ;;  %v770_v47 = vadd.f32 %v766_v35, %v764_v43 }
 0x222   :  { %v879_v48 = vmul.f32 -1.442695, %v769_v44  ;;  %v878_v49 = vmul.f32 -1.442695, %v768_v45 }
 0x223   :  { %977 = vpow2.f32 %v877_v46  ;;  %v880_v50 = vmul.f32 -1.442695, %v770_v47 }
 0x224   :  { %979 = vpow2.f32 %v879_v48 }
 0x225   :  { %981 = vpow2.f32 %v878_v49 }
 0x226   :  { %983 = vpow2.f32 %v880_v50 }
 0x22d   :  { %v978_v51 = vpop.eup %977 }
 0x22e   :  { %v980_v52 = vpop.eup %979  ;;  %v783_v53 = vadd.f32 1.0, %v978_v51 }
 0x22f   :  { %v982_v54 = vpop.eup %981  ;;  %v785_v55 = vadd.f32 1.0, %v980_v52 }
 0x230   :  { %v984_v56 = vpop.eup %983  ;;  %985 = vrcp.f32 %v783_v53  ;;  %v784_v57 = vadd.f32 1.0, %v982_v54 }
 0x231   :  { %987 = vrcp.f32 %v785_v55  ;;  %v786_v58 = vadd.f32 1.0, %v984_v56 }
 0x232   :  { %989 = vrcp.f32 %v784_v57 }
 0x233   :  { %991 = vrcp.f32 %v786_v58 }
 0x23a   :  { %v986_v3 = vpop.eup %985 }
 0x23b   :  { %v988_v4 = vpop.eup %987 }
 0x23c   :  { %v990_v6 = vpop.eup %989 }
 0x23d   :  { %v992_v7 = vpop.eup %991  ;;  %v799_v0 = vcombine.low %v986_v3, %v990_v6 }
 0x23e   :  { %v800_v8 = vcombine.low %v988_v4, %v992_v7 }
 0x23f   :  { %v807_v9 = vrot.slane %v799_v0, %v806_v5 }
 0x240   :  { %v814_v1 = vrot.slane %v800_v8, %v806_v5 }
 0x242   :  { %v815_v10 = vcombine.low %v807_v9, %v814_v1 }
 0x244   :  { %v822_v11 = vrot.slane %v815_v10, %v806_v5 }
 0x246   :  { %828 = vst.msk [vmem:[%s1248_s7] sm:$0xf] %vm826_vm1, %v822_v11 }

</bundles_post_ra>
